<compile_context>
chip_gen: v7x
topology: tpu7x:2x2x1
jax: 0.10.0
libtpu: 0.0.40
codegen_flags: <defaults>
</compile_context>

<pallas_src>
import functools

import jax
import jax.numpy as jnp
from jax import lax
from jax.experimental import pallas as pl
from jax.experimental.pallas import tpu as pltpu


# ----------------------------------------------------------------------------
# Bicubic interpolation matrices (PyTorch semantics: a = -0.75, clamped taps,
# align_corners=False).  Built once on the host side.
# ----------------------------------------------------------------------------
def _cubic_weight(t, a=-0.75):
    at = jnp.abs(t)
    w_near = ((a + 2.0) * at - (a + 3.0)) * at * at + 1.0          # |t| <= 1
    w_far = ((a * at - 5.0 * a) * at + 8.0 * a) * at - 4.0 * a      # 1 < |t| < 2
    return jnp.where(at <= 1.0, w_near, jnp.where(at < 2.0, w_far, 0.0))


def build_bicubic_matrix(in_size, out_size, scale):
    """M (out_size, in_size) s.t. y = M @ x is 1-D bicubic interpolation."""
    i = jnp.arange(out_size, dtype=jnp.float32)
    src = (i + 0.5) / scale - 0.5
    i0 = jnp.floor(src)
    frac = src - i0
    offsets = jnp.array([-1, 0, 1, 2], dtype=jnp.float32)
    w = _cubic_weight(frac[:, None] - offsets[None, :])              # (out, 4)
    idx = jnp.clip(i0[:, None].astype(jnp.int32) + offsets[None, :].astype(jnp.int32),
                   0, in_size - 1)                                    # (out, 4)
    M = jnp.zeros((out_size, in_size), dtype=jnp.float32)
    M = M.at[jnp.arange(out_size)[:, None], idx].add(w)
    return M


# ----------------------------------------------------------------------------
# Bicubic upsample kernel: a block of Bt (N*C) slices per grid step.
# ----------------------------------------------------------------------------
def _bicubic_kernel(wh_ref, wwt_ref, x_ref, o_ref):
    Bt, H, W = x_ref.shape
    Ho = wh_ref.shape[0]
    Wo = wwt_ref.shape[1]

    x = x_ref[...].astype(jnp.float32)                               # (Bt, H, W)

    # Width pass: one big 2-D MXU matmul over the whole block.
    t = jnp.dot(x.reshape(Bt * H, W), wwt_ref[...],
                preferred_element_type=jnp.float32)                  # (Bt*H, Wo)

    # Height pass: batched contraction; shared Wh broadcast once per step.
    whb = jnp.broadcast_to(wh_ref[...], (Bt, Ho, H))                 # hoisted
    out = jnp.einsum('boh,bhw->bow', whb, t.reshape(Bt, H, Wo),
                     preferred_element_type=jnp.float32)             # (Bt, Ho, Wo)

    # 2-D output slab (collapse of leading dims is layout-trivial).
    o_ref[...] = out.reshape(Bt * Ho, Wo).astype(o_ref.dtype)


def bicubic_upsample(x, scale_factor=2, block_b=None):
    """x: (N, C, H, W) -> (N, C, H*s, W*s), PyTorch bicubic (align_corners=False)."""
    N, C, H, W = x.shape
    s = int(scale_factor)
    Ho, Wo = H * s, W * s
    B = N * C

    wh = build_bicubic_matrix(H, Ho, float(s))                       # (Ho, H)
    wwt = build_bicubic_matrix(W, Wo, float(s)).T                    # (W, Wo), pre-transposed

    if block_b is None:
        # Keep block activations modest (v7x has only 64 MiB VMEM) but aim for
        # >= 2 grid steps so both v7x TensorCores get work.
        per_slice_bytes = (H * W + Ho * Wo) * 4
        vmem_budget = 2 * 1024 * 1024
        block_b = max(1, min(pl.cdiv(B, 2), vmem_budget // per_slice_bytes))
    Bt = max(1, min(block_b, B))
    n_blocks = pl.cdiv(B, Bt)
    B_pad = n_blocks * Bt

    xb = x.reshape(B, H, W)
    if B_pad != B:
        xb = jnp.pad(xb, ((0, B_pad - B), (0, 0), (0, 0)))

    flops = 2 * B_pad * (H * W * Wo + Ho * H * Wo)
    bytes_accessed = 4 * (B_pad * H * W + B_pad * Ho * Wo + Ho * H + W * Wo)

    out2d = pl.pallas_call(
        _bicubic_kernel,
        out_shape=jax.ShapeDtypeStruct((B_pad * Ho, Wo), x.dtype),
        grid_spec=pltpu.PrefetchScalarGridSpec(
            num_scalar_prefetch=0,
            grid=(n_blocks,),
            in_specs=[
                pl.BlockSpec((Ho, H), lambda i: (0, 0)),             # Wh (full)
                pl.BlockSpec((W, Wo), lambda i: (0, 0)),             # Ww^T (full)
                pl.BlockSpec((Bt, H, W), lambda i: (i, 0, 0)),       # slice block
            ],
            out_specs=pl.BlockSpec((Bt * Ho, Wo), lambda i: (i, 0)),
        ),
        compiler_params=pltpu.CompilerParams(
            dimension_semantics=("parallel",)),
        cost_estimate=pl.CostEstimate(flops=flops, transcendentals=0,
                                      bytes_accessed=bytes_accessed),
    )(wh, wwt, xb)

    return out2d.reshape(B_pad, Ho, Wo)[:B].reshape(N, C, Ho, Wo)


# ----------------------------------------------------------------------------
# 'same' Conv2d (+ optional ReLU) kernel, NHWC, one image per grid step.
# The K*K taps are accumulated as shifted-window MXU matmuls in f32.
# ----------------------------------------------------------------------------
def _conv2d_kernel(x_ref, w_ref, b_ref, o_ref, *, K, H, W, relu):
    # x_ref: (H+K-1, W+K-1, Cin) padded image   (leading batch dim squeezed)
    # w_ref: (K*K, Cin, Cout)   b_ref: (1, Cout)   o_ref: (H, W, Cout)
    Cin = w_ref.shape[1]
    Cout = w_ref.shape[2]

    acc = jnp.zeros((H * W, Cout), jnp.float32)
    for dy in range(K):
        for dx in range(K):
            patch = x_ref[dy:dy + H, dx:dx + W, :].astype(jnp.float32)
            acc = acc + jnp.dot(patch.reshape(H * W, Cin),
                                w_ref[dy * K + dx],
                                preferred_element_type=jnp.float32)

    acc = acc + b_ref[...]                                            # (1, Cout) bcast
    if relu:
        acc = jnp.maximum(acc, 0.0)
    o_ref[...] = acc.reshape(H, W, Cout).astype(o_ref.dtype)


def conv2d_same(x_nhwc, w_oihw, b, *, relu):
    """'same' conv (stride 1, odd K), NHWC activations, PyTorch OIHW weights."""
    N, H, W, Cin = x_nhwc.shape
    Cout, Cin_w, K, K2 = w_oihw.shape
    assert Cin_w == Cin and K == K2 and K % 2 == 1
    P = (K - 1) // 2
    Hp, Wp = H + 2 * P, W + 2 * P

    xp = jnp.pad(x_nhwc, ((0, 0), (P, P), (P, P), (0, 0)))            # layout plumbing
    w_kio = jnp.transpose(w_oihw, (2, 3, 1, 0)).reshape(K * K, Cin, Cout)
    b2 = b.reshape(1, Cout).astype(jnp.float32)

    kernel = functools.partial(_conv2d_kernel, K=K, H=H, W=W, relu=relu)

    flops = 2 * N * H * W * K * K * Cin * Cout
    bytes_accessed = 4 * (N * Hp * Wp * Cin + N * H * W * Cout
                          + K * K * Cin * Cout + Cout)

    out = pl.pallas_call(
        kernel,
        out_shape=jax.ShapeDtypeStruct((N, H, W, Cout), x_nhwc.dtype),
        grid_spec=pltpu.PrefetchScalarGridSpec(
            num_scalar_prefetch=0,
            grid=(N,),
            in_specs=[
                pl.BlockSpec((None, Hp, Wp, Cin), lambda n: (n, 0, 0, 0)),
                pl.BlockSpec((K * K, Cin, Cout), lambda n: (0, 0, 0)),
                pl.BlockSpec((1, Cout), lambda n: (0, 0)),
            ],
            out_specs=pl.BlockSpec((None, H, W, Cout), lambda n: (n, 0, 0, 0)),
        ),
        compiler_params=pltpu.CompilerParams(
            dimension_semantics=("parallel",)),
        cost_estimate=pl.CostEstimate(flops=flops, transcendentals=0,
                                      bytes_accessed=bytes_accessed),
    )(xp, w_kio, b2)
    return out


# ----------------------------------------------------------------------------
# Full SRCNN forward (Pallas kernels + wrapper layout plumbing).
# ----------------------------------------------------------------------------
def srcnn_forward(x, params, scale_factor=2):
    up = bicubic_upsample(x, scale_factor)                            # (N, C, Ho, Wo)
    h = jnp.transpose(up, (0, 2, 3, 1))                               # NHWC (C in lanes)
    h = conv2d_same(h, params['w1'], params['b1'], relu=True)
    h = conv2d_same(h, params['w2'], params['b2'], relu=True)
    h = conv2d_same(h, params['w3'], params['b3'], relu=False)
    return jnp.transpose(h, (0, 3, 1, 2))                             # back to NCHW


def init_srcnn_params(key, n_channels=3, f1=9, f2=5, f3=5, h1=64, h2=32):
    """PyTorch-style uniform(-1/sqrt(fan_in), 1/sqrt(fan_in)) init."""
    def conv_init(k, cout, cin, ksz):
        kw, kb = jax.random.split(k)
        bound = float(1.0 / (cin * ksz * ksz) ** 0.5)
        w = jax.random.uniform(kw, (cout, cin, ksz, ksz), jnp.float32, -bound, bound)
        b = jax.random.uniform(kb, (cout,), jnp.float32, -bound, bound)
        return w, b
    k1, k2, k3 = jax.random.split(key, 3)
    w1, b1 = conv_init(k1, h1, n_channels, f1)
    w2, b2 = conv_init(k2, h2, h1, f2)
    w3, b3 = conv_init(k3, n_channels, h2, f3)
    return dict(w1=w1, b1=b1, w2=w2, b2=b2, w3=w3, b3=b3)


# ----------------------------------------------------------------------------
# Pure-JAX reference for correctness checking.
# ----------------------------------------------------------------------------
def bicubic_upsample_ref(x, scale_factor=2):
    N, C, H, W = x.shape
    s = int(scale_factor)
    Ho, Wo = H * s, W * s
    wh = build_bicubic_matrix(H, Ho, float(s))
    ww = build_bicubic_matrix(W, Wo, float(s))
    xf = x.astype(jnp.float32)
    out = jnp.einsum('oh,nchw->ncow', wh, xf, precision=lax.Precision.HIGHEST)
    out = jnp.einsum('pw,ncow->ncop', ww, out, precision=lax.Precision.HIGHEST)
    return out.astype(x.dtype)


def _conv2d_same_ref(x_nchw, w, b):
    K = w.shape[-1]
    P = (K - 1) // 2
    y = lax.conv_general_dilated(x_nchw, w, window_strides=(1, 1),
                                 padding=((P, P), (P, P)),
                                 dimension_numbers=('NCHW', 'OIHW', 'NCHW'),
                                 precision=lax.Precision.HIGHEST)
    return y + b[None, :, None, None]


def srcnn_forward_ref(x, params, scale_factor=2):
    up = bicubic_upsample_ref(x, scale_factor)
    h = jax.nn.relu(_conv2d_same_ref(up, params['w1'], params['b1']))
    h = jax.nn.relu(_conv2d_same_ref(h, params['w2'], params['b2']))
    return _conv2d_same_ref(h, params['w3'], params['b3'])


if __name__ == "__main__":
    key = jax.random.PRNGKey(0)
    kx, kp = jax.random.split(key)

    N, C, H, W = 2, 3, 16, 16            # SRCNN default n_channels=3
    x = jax.random.normal(kx, (N, C, H, W), dtype=jnp.float32)
    params = init_srcnn_params(kp, n_channels=C)

    # Pallas bicubic front-end check.
    up = bicubic_upsample(x, scale_factor=2)
    jax.block_until_ready(up)
    up_ref = bicubic_upsample_ref(x, scale_factor=2)
    assert up.shape == (N, C, 2 * H, 2 * W), up.shape
    assert jnp.allclose(up, up_ref, atol=1e-3, rtol=1e-3), "bicubic mismatch"

    # Full SRCNN forward.
    y = jax.jit(srcnn_forward)(x, params)
    y = jax.block_until_ready(y)
    y_ref = srcnn_forward_ref(x, params)

    assert y.shape == (N, C, 2 * H, 2 * W), y.shape
    assert jnp.allclose(y, y_ref, atol=1e-3, rtol=1e-3), "SRCNN forward mismatch"

    print("KERNEL_OK")
</pallas_src>

<mosaic_0001>
module attributes {stable_mosaic.version = 11 : i64} {
  func.func @_bicubic_kernel(%arg0: i32, %arg1: memref<32x16xf32, #tpu.memory_space<vmem>>, %arg2: memref<16x32xf32, #tpu.memory_space<vmem>>, %arg3: memref<3x16x16xf32, #tpu.memory_space<vmem>>, %arg4: memref<96x32xf32, #tpu.memory_space<vmem>>) attributes {dimension_semantics = [#tpu.dimension_semantics<parallel>], iteration_bounds = array<i64: 2>, scalar_prefetch = 0 : i64, scratch_operands = 0 : i64, tpu.core_type = #tpu.core_type<tc>, window_params = [{pipeline_mode = #tpu.pipeline_mode<synchronous>, transform_indices = @transform_0, window_bounds = array<i64: 32, 16>}, {pipeline_mode = #tpu.pipeline_mode<synchronous>, transform_indices = @transform_1, window_bounds = array<i64: 16, 32>}, {transform_indices = @transform_2, window_bounds = array<i64: 3, 16, 16>}, {transform_indices = @transform_3, window_bounds = array<i64: 96, 32>}]} {
    %c0 = arith.constant 0 : index
    %c0_0 = arith.constant 0 : index
    %c0_1 = arith.constant 0 : index
    %0 = vector.load %arg3[%c0, %c0_0, %c0_1] : memref<3x16x16xf32, #tpu.memory_space<vmem>>, vector<3x16x16xf32>
    %1 = vector.shape_cast %0 : vector<3x16x16xf32> to vector<48x16xf32>
    %c0_2 = arith.constant 0 : index
    %c0_3 = arith.constant 0 : index
    %2 = vector.load %arg2[%c0_2, %c0_3] : memref<16x32xf32, #tpu.memory_space<vmem>>, vector<16x32xf32>
    %cst = arith.constant dense<0.000000e+00> : vector<48x32xf32>
    %3 = tpu.matmul %1, %2, %cst {dimension_numbers = #tpu.dot_dimension_numbers<[1], [0], [0], [1], [0, 0, 1, 1], [], []>} : vector<48x16xf32>, vector<16x32xf32>, vector<48x32xf32> -> vector<48x32xf32>
    %c0_4 = arith.constant 0 : index
    %c0_5 = arith.constant 0 : index
    %4 = vector.load %arg1[%c0_4, %c0_5] : memref<32x16xf32, #tpu.memory_space<vmem>>, vector<32x16xf32>
    %5 = vector.shape_cast %4 : vector<32x16xf32> to vector<1x32x16xf32>
    %6 = vector.broadcast %5 : vector<1x32x16xf32> to vector<3x32x16xf32>
    %7 = vector.shape_cast %3 : vector<48x32xf32> to vector<3x16x32xf32>
    "tpu.trace_start"() <{level = 10 : i32, message = "boh,bhw->bow"}> : () -> ()
    %cst_6 = arith.constant dense<0.000000e+00> : vector<3x32x32xf32>
    %8 = tpu.matmul %6, %7, %cst_6 {dimension_numbers = #tpu.dot_dimension_numbers<[2], [1], [1], [2], [0, 0, 0, 1, 1, 2], [0], [0]>} : vector<3x32x16xf32>, vector<3x16x32xf32>, vector<3x32x32xf32> -> vector<3x32x32xf32>
    "tpu.trace_stop"() : () -> ()
    %9 = vector.shape_cast %8 : vector<3x32x32xf32> to vector<96x32xf32>
    %c0_7 = arith.constant 0 : index
    %c0_8 = arith.constant 0 : index
    %10 = vector.load %arg4[%c0_7, %c0_8] : memref<96x32xf32, #tpu.memory_space<vmem>>, vector<96x32xf32>
    tpu.vector_store %arg4[%c0_7, %c0_8], %9 {strides = array<i32>} : memref<96x32xf32, #tpu.memory_space<vmem>>, vector<96x32xf32>,
    return
  }
  func.func @transform_0(%arg0: i32) -> (i32, i32) {
    %c0_i32 = arith.constant 0 : i32
    %c0_i32_0 = arith.constant 0 : i32
    %c0_i32_1 = arith.constant 0 : i32
    return %c0_i32, %c0_i32_0 : i32, i32
  }
  func.func @transform_1(%arg0: i32) -> (i32, i32) {
    %c0_i32 = arith.constant 0 : i32
    %c0_i32_0 = arith.constant 0 : i32
    %c0_i32_1 = arith.constant 0 : i32
    return %c0_i32, %c0_i32_0 : i32, i32
  }
  func.func @transform_2(%arg0: i32) -> (i32, i32, i32) {
    %c0_i32 = arith.constant 0 : i32
    %c0_i32_0 = arith.constant 0 : i32
    %c0_i32_1 = arith.constant 0 : i32
    return %arg0, %c0_i32, %c0_i32_0 : i32, i32, i32
  }
  func.func @transform_3(%arg0: i32) -> (i32, i32) {
    %c0_i32 = arith.constant 0 : i32
    %c0_i32_0 = arith.constant 0 : i32
    return %arg0, %c0_i32 : i32, i32
  }
}

</mosaic_0001>

<bundles_post_ra>
// kernel: tpu_custom_call.1
= control target key start
LH: loop header
LB: loop body
LE: loop exit
PB: predicated region body
PF: predicated region fallthrough
CT: control target
= control target key end

     0   :  { %8 = vsyncpa [#allocation3], 0  ;;  %s1070_s0 = inlined_call_operand.vmem [shape: f32[32,16], index: 0, kind: input, shape index: {}]   ;;  %s1071_s1 = inlined_call_operand.vmem [shape: f32[16,32], index: 1, kind: input, shape index: {}]   ;;  %s1072_s2 = inlined_call_operand.hbm [shape: f32[6,16,16], index: 2, kind: input, shape index: {}]   ;;  %s1073_s3 = inlined_call_operand.vmem [shape: f32[192,32], index: 3, kind: output, shape index: {}]  }
   0x1   :  { %10 = vsyncpa [#allocation3 + $0x1], 0  ;;  %s915_s12 = smov 0   ;;  %s917_s13 = smov 0  }
   0x2   :  { %s919_s14 = smov 0   ;;  %s921_s15 = smov 0  }
   0x3 LB: > { %s667_s16 = sadd.s32 4294967295, %s890_s15   ;;  %s935_s17 = sadd.s32 1, %s890_s15   ;;  %s890_s15 = sphi %s921_s15, %s1080_s15   ;;  %s886_s14 = sphi %s919_s14, %s1079_s14   ;;  %s882_s13 = sphi %s917_s13, %s1078_s13   ;;  %s878_s12 = sphi %s915_s12, %s1077_s12  }
   0x4   : > { %s62_s18 = ssub.s32 %s890_s15, %s935_s17  ;;  %s65_s19 = sadd.s32 1, %s886_s14 }
   0x5   : > { %p63_p0 = scmp.eq.s32.totalorder %s62_s18, 0  ;;  %p72_p1 = scmp.ne.s32.totalorder %s886_s14, %s882_s13 }
   0x6   : > { %p73_p2 = scmp.eq.s32.totalorder %s890_s15, 0  ;;  %p78_p3 = scmp.ne.s32.totalorder %s882_s13, %s878_s12 }
   0x7   : > { %s945_s20 = scalar_select %p63_p0, %s886_s14, %s65_s19  }
   0x8   : > { %p74_p4 = por %p73_p2, %p72_p1  ;;  %p79_p5 = scmp.eq.s32.totalorder %s667_s16, 0 }
   0x9   : > { %p791_p6 = scmp.lt.s32.totalorder %s890_s15, 2  ;;  %s134_s22 = sand.u32 1, %s886_s14  }
   0xa   : > { %p950_p7 = por %p79_p5, %p78_p3  ;;  %s783_s23 = smul.u32 48, %s134_s22 }
   0xb   : > { %s697_s24 = smul.u32 768, %s890_s15  ;;  %p956_p8 = pnand %p791_p6, %p74_p4 }
   0xc   : > { %s138_s29 = scalar_lea.vmem [#allocation2], %s783_s23  ;;  %s968_s4 = scalar_lea.sflag [#allocation3], %s134_s22 }
   0xd   : > { %s963_s28 = scalar_lea.hbm %s1072_s2, %s697_s24  ;;  %s146_s30 = sshll.u32 %s138_s29, 4  ;;  %s965_s30 = int_to_ptr.vmem [resolvable:$true] %s146_s30 }
   0xe   : > { %s826_s5 = scalar_lea.hbm %s963_s28, 768  ;;  %p828_p11 = pneg %p956_p8 }
   0xf   : > { %p827_p10 = scmp.ne.s32.totalorder %s963_s28, %s826_s5  ;;  %s831_s8 = scalar_lea.hbm %s1072_s2, 1536 }
  0x10   : > { %p832_p0 = scmp.lt.u32.totalorder %s963_s28, %s1072_s2  ;;  %p833_p1 = scmp.lt.u32.totalorder %s831_s8, %s826_s5 }
  0x11   : > { %p829_p12 = pnand %p828_p11, %p827_p10  ;;  %p835_p3 = scmp.lt.u32.totalorder %s826_s5, %s963_s28 }
  0x12   : > { %p834_p2 = por %p833_p1, %p832_p0 }
  0x13   : > { %p830_p13 = pneg %p829_p12 }
  0x14   : > { %p836_p4 = por %p835_p3, %p834_p2 }
  0x16   : > { %p837_p5 = pnand %p836_p4, %p830_p13 }
  0x18   : > { %840 = shalt.err (!%p837_p5)
}
  0x19   : > { %s841_s11 = scalar_lea.vmem %s965_s30, 768  ;;  %s892_s12 = smov [#allocation2]  }
  0x1a   : > { %p842_p6 = scmp.ne.s32.totalorder %s965_s30, %s841_s11  ;;  %s846_s18 = sshll.u32 %s892_s12, 4  ;;  %s847_s18 = int_to_ptr.vmem [resolvable:$false] %s846_s18 }
  0x1b   : > { %s848_s19 = scalar_lea.vmem %s847_s18, 1536  ;;  %p849_p9 = scmp.lt.s32.totalorder %s965_s30, %s847_s18 }
  0x1c   : > { %p844_p10 = pnand %p842_p6, %p828_p11  ;;  %p850_p0 = scmp.lt.s32.totalorder %s848_s19, %s841_s11 }
  0x1e   : > { %p845_p12 = pneg %p844_p10  ;;  %p851_p1 = por %p850_p0, %p849_p9 }
  0x20   : > { %p852_p2 = pnand %p851_p1, %p845_p12 }
  0x22   : > { %855 = shalt.err (!%p852_p2)
}
  0x23   : > { %s893_s22 = smov 128   ;;  %s894_s23 = smov 8  }
  0x24   : > { %790 = dma.hbm_to_vmem [thread:$0]  (!%p956_p8), %s963_s28, 768, %s965_s30, %s968_s4, %s893_s22, %s893_s22, %s894_s23  }
  0x25   : > { %p154_p11 = scmp.lt.s32.totalorder %s890_s15, 3  ;;  %p1076_p13 = scmp.ge.s32.totalorder %s890_s15, 1 }
  0x27   : > { %p155_p3 = pnand %p1076_p13, %p154_p11 }
  0x28   : > { %s160_s24 = sand.u32 (!%p155_p3), 1, %s882_s13  }
  0x29   : > { %158 = sbr.rel (%p155_p3) target bundleno = 501 (0x1f5), region = 32  ;;  %s161_s27 = scalar_lea.sflag (!%p155_p3), [#allocation3], %s160_s24 }
  0x2a   : > { %s784_s26 = smul.u32 (!%p155_p3), 48, %s160_s24 }
  0x2c   : > { %s164_s29 = scalar_lea.vmem (!%p155_p3), [#allocation2], %s784_s26 }
  0x30   : > { %873 = dma.done.wait (%p950_p7), %s161_s27, 768  }
  0x31   : > { %875 = vsyncadd (%p950_p7), %s161_s27, 4294966528  ;;  %vm202_vm0 = vcmask 130048   ;;  %v200_v0 = vld [vmem:[%s1071_s1] sm:$0xff]  ;;  %v201_v1 = vld [vmem:[%s1071_s1 + $0x8] sm:$0xff]  ;;  %s188_s12 = smul.u32 12, %s667_s16  ;;  %vm587_vm1 = vcmask 261120  }
  0x32   : > { %v194_v2 = vld [vmem:[%s164_s29] sm:$0xff]  ;;  %v767_v3 = vpack.c.bf16 %v201_v1, %v200_v0  ;;  %v195_v4 = vld [vmem:[%s164_s29 + $0x8] sm:$0xff]  ;;  %v196_v5 = vld [vmem:[%s164_s29 + $0x10] sm:$0xff] }
  0x33   : > { %728 = vmatprep.mubr.msk.f32.mxu0 %vm202_vm0, %v194_v2  ;;  %v197_v6 = vld [vmem:[%s164_s29 + $0x18] sm:$0xff]  ;;  %v198_v7 = vld [vmem:[%s164_s29 + $0x20] sm:$0xff]  ;;  %v199_v8 = vld [vmem:[%s164_s29 + $0x28] sm:$0xff]  ;;  %p189_p7 = scmp.lt.s32.totalorder %s188_s12, 23 }
  0x34   : > { %768 = vmatprep.subr.bf16.mxu0 %v767_v3  ;;  %v316_v9 = vld [vmem:[%s1070_s0] sm:$0xff]  ;;  %v317_v15 = vld [vmem:[%s1070_s0 + $0x8] sm:$0xff]  ;;  %v318_v17 = vld [vmem:[%s1070_s0 + $0x10] sm:$0xff] }
  0x35   : > { %770 = vmatpush3.bf16.msra.mxu0 %v767_v3  ;;  %741 = vmatprep.mubr.msk.f32.mxu1 %vm202_vm0, %v316_v9  ;;  %v319_v20 = vld [vmem:[%s1070_s0 + $0x18] sm:$0xff]  ;;  %s1082_s12 = smov (!%p189_p7, %s188_s12), 23 }
  0x36   : > { %s674_s18 = sshll.u32 %s1082_s12, 3 }
  0x37   : > { %s192_s23 = scalar_lea.vmem %s1073_s3, %s674_s18 }
  0x38   : > { %729 = vmatmul.mubr.msk.f32.vlgmr.msra.gmra.mrb[0].mxu0 %vm202_vm0, %v195_v4 }
  0x39   : > { %731 = vmatprep.mubr.msk.f32.mxu0 %vm202_vm0, %v196_v5 }
  0x3c   : > { %732 = vmatmul.mubr.msk.f32.gmra.mrb[2].mxu0 %vm202_vm0, %v197_v6 }
  0x3d   : > { %734 = vmatprep.mubr.msk.f32.mxu0 %vm202_vm0, %v198_v7 }
  0x40   : > { %735 = vmatmul.mubr.msk.f32.gmra.mrb[4].mxu0 %vm202_vm0, %v199_v8 }
  0x41   : > { %761 = vmatprep.mubr.msk.f32.mxu0 %vm202_vm0, %v316_v9 }
 0x10b   : > { %v730_v10 = vpop.f32.mrb[0].mxu0 }
 0x10c   : > { %v287_v11 = vpop.f32.mrb[1].mxu0 }
 0x10d   : > { %v771_v12 = vpack.c.bf16 %v730_v10, %v287_v11 }
 0x10f   : > { %v733_v13 = vpop.f32.mrb[2].mxu0  ;;  %772 = vmatprep.subr.bf16.mxu1 %v771_v12 }
 0x110   : > { %v297_v14 = vpop.f32.mrb[3].mxu0  ;;  %774 = vmatpush3.bf16.msra.mxu1 %v771_v12 }
 0x111   : > { %v775_v16 = vpack.c.bf16 %v733_v13, %v297_v14 }
 0x113   : > { %v736_v18 = vpop.f32.mrb[4].mxu0  ;;  %776 = vmatprep.subr.bf16.mxu1 %v775_v16  ;;  %742 = vmatmul.mubr.msk.f32.vlgmr.msra.gmra.mrb[0].mxu1 %vm202_vm0, %v317_v15 }
 0x114   : > { %v307_v19 = vpop.f32.mrb[5].mxu0  ;;  %778 = vmatpush3.bf16.msra.mxu1 %v775_v16  ;;  %744 = vmatprep.mubr.msk.f32.mxu1 %vm202_vm0, %v318_v17 }
 0x115   : > { %v779_v21 = vpack.c.bf16 %v736_v18, %v307_v19 }
 0x117   : > { %780 = vmatprep.subr.bf16.mxu0 %v779_v21  ;;  %745 = vmatmul.mubr.msk.f32.gmra.mrb[2].mxu1 %vm202_vm0, %v319_v20 }
 0x118   : > { %782 = vmatpush3.bf16.msra.mxu0 %v779_v21  ;;  %751 = vmatprep.mubr.msk.f32.mxu1 %vm202_vm0, %v316_v9 }
 0x11b   : > { %752 = vmatmul.mubr.msk.f32.vlgmr.msra.gmra.mrb[4].mxu1 %vm202_vm0, %v317_v15  ;;  %762 = vmatmul.mubr.msk.f32.vlgmr.msra.gmra.mrb[6].mxu0 %vm202_vm0, %v317_v15 }
 0x11c   : > { %754 = vmatprep.mubr.msk.f32.mxu1 %vm202_vm0, %v318_v17  ;;  %764 = vmatprep.mubr.msk.f32.mxu0 %vm202_vm0, %v318_v17 }
 0x11f   : > { %755 = vmatmul.mubr.msk.f32.gmra.mrb[6].mxu1 %vm202_vm0, %v319_v20  ;;  %765 = vmatmul.mubr.msk.f32.gmra.mrb[8].mxu0 %vm202_vm0, %v319_v20 }
 0x1e6   : > { %v743_v22 = vpop.f32.mrb[0].mxu1 }
 0x1e7   : > { %589 = vst.msk [vmem:[%s192_s23 + $0x8] sm:$0xff] %vm587_vm1, %v743_v22  ;;  %v398_v23 = vpop.f32.mrb[1].mxu1 }
 0x1e8   : > { %588 = vst.msk [vmem:[%s192_s23] sm:$0xff] %vm587_vm1, %v398_v23 }
 0x1ea   : > { %v746_v24 = vpop.f32.mrb[2].mxu1 }
 0x1eb   : > { %591 = vst.msk [vmem:[%s192_s23 + $0x18] sm:$0xff] %vm587_vm1, %v746_v24  ;;  %v408_v25 = vpop.f32.mrb[3].mxu1 }
 0x1ec   : > { %590 = vst.msk [vmem:[%s192_s23 + $0x10] sm:$0xff] %vm587_vm1, %v408_v25 }
 0x1ee   : > { %v753_v26 = vpop.f32.mrb[4].mxu1  ;;  %v763_v27 = vpop.f32.mrb[6].mxu0 }
 0x1ef   : > { %593 = vst.msk [vmem:[%s192_s23 + $0x28] sm:$0xff] %vm587_vm1, %v753_v26  ;;  %597 = vst.msk [vmem:[%s192_s23 + $0x48] sm:$0xff] %vm587_vm1, %v763_v27  ;;  %v483_v28 = vpop.f32.mrb[5].mxu1  ;;  %v568_v29 = vpop.f32.mrb[7].mxu0 }
 0x1f0   : > { %592 = vst.msk [vmem:[%s192_s23 + $0x20] sm:$0xff] %vm587_vm1, %v483_v28  ;;  %596 = vst.msk [vmem:[%s192_s23 + $0x40] sm:$0xff] %vm587_vm1, %v568_v29 }
 0x1f2   : > { %v756_v30 = vpop.f32.mrb[6].mxu1  ;;  %v766_v31 = vpop.f32.mrb[8].mxu0 }
 0x1f3   : > { %595 = vst.msk [vmem:[%s192_s23 + $0x38] sm:$0xff] %vm587_vm1, %v756_v30  ;;  %599 = vst.msk [vmem:[%s192_s23 + $0x58] sm:$0xff] %vm587_vm1, %v766_v31  ;;  %v493_v32 = vpop.f32.mrb[7].mxu1  ;;  %v578_v33 = vpop.f32.mrb[9].mxu0 }
 0x1f4   : > { %594 = vst.msk [vmem:[%s192_s23 + $0x30] sm:$0xff] %vm587_vm1, %v493_v32  ;;  %598 = vst.msk [vmem:[%s192_s23 + $0x50] sm:$0xff] %vm587_vm1, %v578_v33 }
 0x1f5 PF: > { %p13_p8 = scmp.ge.s32.totalorder %s935_s17, 4   ;;  %s1077_s12 = smov %s882_s13 }
 0x1f6   : > { %s1078_s13 = smov %s886_s14  ;;  %s1079_s14 = smov %s945_s20 }
 0x1f7   : > { %s1080_s15 = smov %s935_s17  ;;  %15 = sbr.rel (!%p13_p8) target bundleno = 3 (0x3), region = 72 }
 0x1fe   :  { %622 = vsyncpa [#allocation3], 1 }
 0x1ff   :  { %624 = vsyncpa [#allocation3 + $0x1], 1 }

</bundles_post_ra>
